<compile_context>
chip_gen: v7x
topology: tpu7x:2x2x1
jax: 0.10.0
libtpu: 0.0.40
codegen_flags: <defaults>
</compile_context>

<pallas_src>
import functools

import jax
import jax.numpy as jnp
import numpy as np
from jax.experimental import pallas as pl
from jax.experimental.pallas import tpu as pltpu

EPS = 1e-5  # nn.BatchNorm1d default eps


def _bn_masked(y, mask, gamma, beta, n_valid):
    """One-pass batch norm over the valid lane columns (biased variance)."""
    inv_n = 1.0 / n_valid
    ym = y * mask                                       # zero out invalid columns
    s = jnp.sum(ym, axis=1, keepdims=True)              # (C, 1)
    ss = jnp.sum(ym * y, axis=1, keepdims=True)         # (C, 1) == sum(y*y*mask)
    mean = s * inv_n
    var = ss * inv_n - mean * mean
    scale = jax.lax.rsqrt(var + EPS) * gamma            # EUP rsqrt, hoisted per-channel
    shift = beta - mean * scale
    return y * scale + shift


def residual_conv1d_kernel(xp_ref, mask_ref, w1_ref, g1_ref, bt1_ref,
                           w2_ref, g2_ref, bt2_ref,
                           wm_ref, gm_ref, btm_ref,
                           o_ref, *, K, dil, pad, n_valid):
    Np = xp_ref.shape[1]
    xp = xp_ref[...]                                    # (Cin, Np)  padded, channels-major
    mask = mask_ref[...]                                # (1, Np)    1.0 at valid output cols

    # ---- conv1: K whole-slab matmuls; tap shift = lane roll (XLU) ----
    acc1 = jnp.dot(w1_ref[0], xp, preferred_element_type=jnp.float32)
    for k in range(1, K):
        xk = pltpu.roll(xp, Np - k * dil, 1)            # xk[:, j] = xp[:, j + k*dil]
        acc1 = acc1 + jnp.dot(w1_ref[k], xk, preferred_element_type=jnp.float32)

    # ---- bn1 (batch stats over valid columns) + ReLU ----
    h = jnp.maximum(_bn_masked(acc1, mask, g1_ref[...], bt1_ref[...], n_valid), 0.0)

    # ---- conv2 input: re-pad per batch with zero scratch traffic:
    #      zero the invalid columns and shift right by `pad` ----
    hp = h * mask
    if pad:
        hp = pltpu.roll(hp, pad, 1)

    # ---- conv2 ----
    acc2 = jnp.dot(w2_ref[0], hp, preferred_element_type=jnp.float32)
    for k in range(1, K):
        hk = pltpu.roll(hp, Np - k * dil, 1)
        acc2 = acc2 + jnp.dot(w2_ref[k], hk, preferred_element_type=jnp.float32)
    out2 = _bn_masked(acc2, mask, g2_ref[...], bt2_ref[...], n_valid)

    # ---- residual: 1x1 conv + bn, realigned to the conv-output columns ----
    r = jnp.dot(wm_ref[...], xp, preferred_element_type=jnp.float32)
    if pad:
        r = pltpu.roll(r, Np - pad, 1)                  # r[:, j] = r_full[:, j + pad]
    r = _bn_masked(r, mask, gm_ref[...], btm_ref[...], n_valid)

    # ---- out = bn2(conv2(...)) + residual  (lane-dense store) ----
    o_ref[...] = (out2 + r).astype(o_ref.dtype)


def residual_conv1d(x, params, *, kernel_size=3, dilation=1, padding=1):
    """x: (B, Cin, L) float32 (PyTorch NCL). Returns (B, Cout, L)."""
    B, Cin, L = x.shape
    Cout, _, K = params["w1"].shape
    assert K == kernel_size
    assert L + 2 * padding - dilation * (K - 1) == L, \
        "pick padding/dilation so the residual add is shape-valid"
    Lp = L + 2 * padding
    ncols = B * Lp
    Np = ((ncols + 127) // 128) * 128                   # lane-dense column count

    # glue: channels on sublanes, flattened (batch, padded seq) on lanes
    x_pad = jnp.pad(x.astype(jnp.float32), ((0, 0), (0, 0), (padding, padding)))  # (B,Cin,Lp)
    x_cols = jnp.transpose(x_pad, (1, 0, 2)).reshape(Cin, ncols)
    x_cols = jnp.pad(x_cols, ((0, 0), (0, Np - ncols)))                            # (Cin, Np)

    col = jnp.arange(Np)
    mask = ((col < ncols) & ((col % Lp) < L)).astype(jnp.float32).reshape(1, Np)

    # PyTorch Conv1d weight (Cout, Cin, K) -> per-tap (Cout, Cin) matrices
    w1t = jnp.transpose(params["w1"], (2, 0, 1)).astype(jnp.float32)   # (K, Cout, Cin)
    w2t = jnp.transpose(params["w2"], (2, 0, 1)).astype(jnp.float32)   # (K, Cout, Cout)
    wmt = params["wm"][:, :, 0].astype(jnp.float32)                    # (Cout, Cin)
    colv = lambda v: v.reshape(-1, 1).astype(jnp.float32)
    # NOTE: conv biases (b1, b2, bm) are intentionally NOT passed: batch-stat BatchNorm
    # subtracts the per-channel mean, so a constant per-channel bias cancels exactly.

    kernel = functools.partial(residual_conv1d_kernel, K=K, dil=dilation,
                               pad=padding, n_valid=float(B * L))
    vmem = pl.BlockSpec(memory_space=pltpu.MemorySpace.VMEM)

    flops = 2 * Np * (K * Cin * Cout + K * Cout * Cout + Cin * Cout)
    bytes_accessed = 4 * (Cin * Np + Np + K * Cin * Cout + K * Cout * Cout
                          + Cin * Cout + 6 * Cout + Cout * Np)

    # TODO(synk): for large B*L, tile the lane axis with a two-pass BN (stats pass on an
    # "arbitrary" reduction axis, then normalize/write) and mark the row axis "parallel"
    # so v7x's two TensorCores split the work; size tiles for 64 MiB VMEM.
    out2d = pl.pallas_call(
        kernel,
        out_shape=jax.ShapeDtypeStruct((Cout, Np), jnp.float32),
        in_specs=[vmem] * 11,
        out_specs=vmem,
        cost_estimate=pl.CostEstimate(flops=flops, transcendentals=3 * Cout,
                                      bytes_accessed=bytes_accessed),
    )(x_cols, mask,
      w1t, colv(params["g1"]), colv(params["bt1"]),
      w2t, colv(params["g2"]), colv(params["bt2"]),
      wmt, colv(params["gm"]), colv(params["btm"]))

    # valid conv outputs live at columns b*Lp + t, t in [0, L)
    out = out2d[:, :ncols].reshape(Cout, B, Lp)[:, :, :L]
    return jnp.transpose(out, (1, 0, 2))                # (B, Cout, L)


def reference_forward(x, params, *, dilation=1, padding=1):
    """Pure-JAX reference mirroring the PyTorch forward (default conv branch)."""
    def conv1d(inp, w, b, pad, dil):
        y = jax.lax.conv_general_dilated(
            inp, w, window_strides=(1,), padding=[(pad, pad)],
            rhs_dilation=(dil,), dimension_numbers=("NCH", "OIH", "NCH"))
        return y + b[None, :, None]

    def bn(y, g, be):
        m = jnp.mean(y, axis=(0, 2), keepdims=True)
        v = jnp.mean((y - m) ** 2, axis=(0, 2), keepdims=True)
        return (y - m) * jax.lax.rsqrt(v + EPS) * g[None, :, None] + be[None, :, None]

    residual = bn(conv1d(x, params["wm"], params["bm"], 0, 1),
                  params["gm"], params["btm"])
    h = jnp.maximum(bn(conv1d(x, params["w1"], params["b1"], padding, dilation),
                       params["g1"], params["bt1"]), 0.0)
    out = bn(conv1d(h, params["w2"], params["b2"], padding, dilation),
             params["g2"], params["bt2"])
    return out + residual


if __name__ == "__main__":
    B, Cin, Cout, L, K = 2, 8, 16, 16, 3
    padding, dilation = 1, 1

    key = jax.random.PRNGKey(0)
    ks = jax.random.split(key, 9)
    params = {
        # conv1: Conv1d(Cin, Cout, K)
        "w1": jax.random.normal(ks[0], (Cout, Cin, K), jnp.float32) * 0.2,
        "b1": jax.random.normal(ks[1], (Cout,), jnp.float32) * 0.1,
        # bn1 affine params
        "g1": 1.0 + 0.1 * jax.random.normal(ks[2], (Cout,), jnp.float32),
        "bt1": 0.1 * jax.random.normal(ks[3], (Cout,), jnp.float32),
        # conv2: Conv1d(Cout, Cout, K)
        "w2": jax.random.normal(ks[4], (Cout, Cout, K), jnp.float32) * 0.2,
        "b2": jax.random.normal(ks[5], (Cout,), jnp.float32) * 0.1,
        "g2": jnp.ones((Cout,), jnp.float32),
        "bt2": jnp.zeros((Cout,), jnp.float32),
        # match_dimensions: Conv1d(Cin, Cout, 1) + BatchNorm1d(Cout)
        "wm": jax.random.normal(ks[6], (Cout, Cin, 1), jnp.float32) * 0.2,
        "bm": jax.random.normal(ks[7], (Cout,), jnp.float32) * 0.1,
        "gm": jnp.ones((Cout,), jnp.float32),
        "btm": jnp.zeros((Cout,), jnp.float32),
    }
    x = jax.random.normal(ks[8], (B, Cin, L), jnp.float32)

    out = residual_conv1d(x, params, kernel_size=K, dilation=dilation, padding=padding)
    out = jax.block_until_ready(out)

    ref = reference_forward(x, params, dilation=dilation, padding=padding)
    np.testing.assert_allclose(np.asarray(out), np.asarray(ref), rtol=1e-4, atol=1e-4)
    print("KERNEL_OK")
</pallas_src>

<mosaic_0001>
module attributes {stable_mosaic.version = 11 : i64} {
  func.func @residual_conv1d_kernel(%arg0: memref<8x128xf32, #tpu.memory_space<vmem>>, %arg1: memref<1x128xf32, #tpu.memory_space<vmem>>, %arg2: memref<3x16x8xf32, #tpu.memory_space<vmem>>, %arg3: memref<16x1xf32, #tpu.memory_space<vmem>>, %arg4: memref<16x1xf32, #tpu.memory_space<vmem>>, %arg5: memref<3x16x16xf32, #tpu.memory_space<vmem>>, %arg6: memref<16x1xf32, #tpu.memory_space<vmem>>, %arg7: memref<16x1xf32, #tpu.memory_space<vmem>>, %arg8: memref<16x8xf32, #tpu.memory_space<vmem>>, %arg9: memref<16x1xf32, #tpu.memory_space<vmem>>, %arg10: memref<16x1xf32, #tpu.memory_space<vmem>>, %arg11: memref<16x128xf32, #tpu.memory_space<vmem>>) attributes {dimension_semantics = [], scalar_prefetch = 0 : i64, scratch_operands = 0 : i64, tpu.core_type = #tpu.core_type<tc>} {
    %c0 = arith.constant 0 : index
    %c0_0 = arith.constant 0 : index
    %0 = vector.load %arg0[%c0, %c0_0] : memref<8x128xf32, #tpu.memory_space<vmem>>, vector<8x128xf32>
    %c0_1 = arith.constant 0 : index
    %c0_2 = arith.constant 0 : index
    %1 = vector.load %arg1[%c0_1, %c0_2] : memref<1x128xf32, #tpu.memory_space<vmem>>, vector<1x128xf32>
    %c0_3 = arith.constant 0 : index
    %c0_4 = arith.constant 0 : index
    %c0_5 = arith.constant 0 : index
    %2 = vector.load %arg2[%c0_3, %c0_4, %c0_5] : memref<3x16x8xf32, #tpu.memory_space<vmem>>, vector<1x16x8xf32>
    %3 = vector.shape_cast %2 : vector<1x16x8xf32> to vector<16x8xf32>
    %cst = arith.constant dense<0.000000e+00> : vector<16x128xf32>
    %4 = tpu.matmul %3, %0, %cst {dimension_numbers = #tpu.dot_dimension_numbers<[1], [0], [0], [1], [0, 0, 1, 1], [], []>} : vector<16x8xf32>, vector<8x128xf32>, vector<16x128xf32> -> vector<16x128xf32>
    %c127_i32 = arith.constant 127 : i32
    %5 = tpu.dynamic_rotate %0 by %c127_i32 dim 1 : vector<8x128xf32>, i32 -> vector<8x128xf32>
    %c1 = arith.constant 1 : index
    %c0_6 = arith.constant 0 : index
    %c0_7 = arith.constant 0 : index
    %6 = vector.load %arg2[%c1, %c0_6, %c0_7] : memref<3x16x8xf32, #tpu.memory_space<vmem>>, vector<1x16x8xf32>
    %7 = vector.shape_cast %6 : vector<1x16x8xf32> to vector<16x8xf32>
    %cst_8 = arith.constant dense<0.000000e+00> : vector<16x128xf32>
    %8 = tpu.matmul %7, %5, %cst_8 {dimension_numbers = #tpu.dot_dimension_numbers<[1], [0], [0], [1], [0, 0, 1, 1], [], []>} : vector<16x8xf32>, vector<8x128xf32>, vector<16x128xf32> -> vector<16x128xf32>
    %9 = arith.addf %4, %8 : vector<16x128xf32>
    %c126_i32 = arith.constant 126 : i32
    %10 = tpu.dynamic_rotate %0 by %c126_i32 dim 1 : vector<8x128xf32>, i32 -> vector<8x128xf32>
    %c2 = arith.constant 2 : index
    %c0_9 = arith.constant 0 : index
    %c0_10 = arith.constant 0 : index
    %11 = vector.load %arg2[%c2, %c0_9, %c0_10] : memref<3x16x8xf32, #tpu.memory_space<vmem>>, vector<1x16x8xf32>
    %12 = vector.shape_cast %11 : vector<1x16x8xf32> to vector<16x8xf32>
    %cst_11 = arith.constant dense<0.000000e+00> : vector<16x128xf32>
    %13 = tpu.matmul %12, %10, %cst_11 {dimension_numbers = #tpu.dot_dimension_numbers<[1], [0], [0], [1], [0, 0, 1, 1], [], []>} : vector<16x8xf32>, vector<8x128xf32>, vector<16x128xf32> -> vector<16x128xf32>
    %14 = arith.addf %9, %13 : vector<16x128xf32>
    %c0_12 = arith.constant 0 : index
    %c0_13 = arith.constant 0 : index
    %15 = vector.load %arg3[%c0_12, %c0_13] : memref<16x1xf32, #tpu.memory_space<vmem>>, vector<16x1xf32>
    %c0_14 = arith.constant 0 : index
    %c0_15 = arith.constant 0 : index
    %16 = vector.load %arg4[%c0_14, %c0_15] : memref<16x1xf32, #tpu.memory_space<vmem>>, vector<16x1xf32>
    %17 = vector.broadcast %1 : vector<1x128xf32> to vector<16x128xf32>
    %18 = arith.mulf %14, %17 : vector<16x128xf32>
    %cst_16 = arith.constant dense<0.000000e+00> : vector<16xf32>
    %19 = vector.multi_reduction <add>, %18, %cst_16 [1] : vector<16x128xf32> to vector<16xf32>
    %20 = vector.shape_cast %19 : vector<16xf32> to vector<16x1xf32>
    %21 = arith.mulf %18, %14 : vector<16x128xf32>
    %cst_17 = arith.constant dense<0.000000e+00> : vector<16xf32>
    %22 = vector.multi_reduction <add>, %21, %cst_17 [1] : vector<16x128xf32> to vector<16xf32>
    %23 = vector.shape_cast %22 : vector<16xf32> to vector<16x1xf32>
    %cst_18 = arith.constant 3.125000e-02 : f32
    %24 = vector.broadcast %cst_18 : f32 to vector<16x1xf32>
    %25 = arith.mulf %20, %24 : vector<16x1xf32>
    %cst_19 = arith.constant 3.125000e-02 : f32
    %26 = vector.broadcast %cst_19 : f32 to vector<16x1xf32>
    %27 = arith.mulf %23, %26 : vector<16x1xf32>
    %28 = arith.mulf %25, %25 : vector<16x1xf32>
    %29 = arith.subf %27, %28 : vector<16x1xf32>
    %cst_20 = arith.constant 9.99999974E-6 : f32
    %30 = vector.broadcast %cst_20 : f32 to vector<16x1xf32>
    %31 = arith.addf %29, %30 : vector<16x1xf32>
    %32 = math.rsqrt %31 : vector<16x1xf32>
    %33 = arith.mulf %32, %15 : vector<16x1xf32>
    %34 = arith.mulf %25, %33 : vector<16x1xf32>
    %35 = arith.subf %16, %34 : vector<16x1xf32>
    %36 = vector.broadcast %33 : vector<16x1xf32> to vector<16x128xf32>
    %37 = arith.mulf %14, %36 : vector<16x128xf32>
    %38 = vector.broadcast %35 : vector<16x1xf32> to vector<16x128xf32>
    %39 = arith.addf %37, %38 : vector<16x128xf32>
    %cst_21 = arith.constant 0.000000e+00 : f32
    %40 = vector.broadcast %cst_21 : f32 to vector<16x128xf32>
    %41 = arith.maximumf %39, %40 : vector<16x128xf32>
    %42 = vector.broadcast %1 : vector<1x128xf32> to vector<16x128xf32>
    %43 = arith.mulf %41, %42 : vector<16x128xf32>
    %c1_i32 = arith.constant 1 : i32
    %44 = tpu.dynamic_rotate %43 by %c1_i32 dim 1 : vector<16x128xf32>, i32 -> vector<16x128xf32>
    %c0_22 = arith.constant 0 : index
    %c0_23 = arith.constant 0 : index
    %c0_24 = arith.constant 0 : index
    %45 = vector.load %arg5[%c0_22, %c0_23, %c0_24] : memref<3x16x16xf32, #tpu.memory_space<vmem>>, vector<1x16x16xf32>
    %46 = vector.shape_cast %45 : vector<1x16x16xf32> to vector<16x16xf32>
    %cst_25 = arith.constant dense<0.000000e+00> : vector<16x128xf32>
    %47 = tpu.matmul %46, %44, %cst_25 {dimension_numbers = #tpu.dot_dimension_numbers<[1], [0], [0], [1], [0, 0, 1, 1], [], []>} : vector<16x16xf32>, vector<16x128xf32>, vector<16x128xf32> -> vector<16x128xf32>
    %c127_i32_26 = arith.constant 127 : i32
    %48 = tpu.dynamic_rotate %44 by %c127_i32_26 dim 1 : vector<16x128xf32>, i32 -> vector<16x128xf32>
    %c1_27 = arith.constant 1 : index
    %c0_28 = arith.constant 0 : index
    %c0_29 = arith.constant 0 : index
    %49 = vector.load %arg5[%c1_27, %c0_28, %c0_29] : memref<3x16x16xf32, #tpu.memory_space<vmem>>, vector<1x16x16xf32>
    %50 = vector.shape_cast %49 : vector<1x16x16xf32> to vector<16x16xf32>
    %cst_30 = arith.constant dense<0.000000e+00> : vector<16x128xf32>
    %51 = tpu.matmul %50, %48, %cst_30 {dimension_numbers = #tpu.dot_dimension_numbers<[1], [0], [0], [1], [0, 0, 1, 1], [], []>} : vector<16x16xf32>, vector<16x128xf32>, vector<16x128xf32> -> vector<16x128xf32>
    %52 = arith.addf %47, %51 : vector<16x128xf32>
    %c126_i32_31 = arith.constant 126 : i32
    %53 = tpu.dynamic_rotate %44 by %c126_i32_31 dim 1 : vector<16x128xf32>, i32 -> vector<16x128xf32>
    %c2_32 = arith.constant 2 : index
    %c0_33 = arith.constant 0 : index
    %c0_34 = arith.constant 0 : index
    %54 = vector.load %arg5[%c2_32, %c0_33, %c0_34] : memref<3x16x16xf32, #tpu.memory_space<vmem>>, vector<1x16x16xf32>
    %55 = vector.shape_cast %54 : vector<1x16x16xf32> to vector<16x16xf32>
    %cst_35 = arith.constant dense<0.000000e+00> : vector<16x128xf32>
    %56 = tpu.matmul %55, %53, %cst_35 {dimension_numbers = #tpu.dot_dimension_numbers<[1], [0], [0], [1], [0, 0, 1, 1], [], []>} : vector<16x16xf32>, vector<16x128xf32>, vector<16x128xf32> -> vector<16x128xf32>
    %57 = arith.addf %52, %56 : vector<16x128xf32>
    %c0_36 = arith.constant 0 : index
    %c0_37 = arith.constant 0 : index
    %58 = vector.load %arg6[%c0_36, %c0_37] : memref<16x1xf32, #tpu.memory_space<vmem>>, vector<16x1xf32>
    %c0_38 = arith.constant 0 : index
    %c0_39 = arith.constant 0 : index
    %59 = vector.load %arg7[%c0_38, %c0_39] : memref<16x1xf32, #tpu.memory_space<vmem>>, vector<16x1xf32>
    %60 = vector.broadcast %1 : vector<1x128xf32> to vector<16x128xf32>
    %61 = arith.mulf %57, %60 : vector<16x128xf32>
    %cst_40 = arith.constant dense<0.000000e+00> : vector<16xf32>
    %62 = vector.multi_reduction <add>, %61, %cst_40 [1] : vector<16x128xf32> to vector<16xf32>
    %63 = vector.shape_cast %62 : vector<16xf32> to vector<16x1xf32>
    %64 = arith.mulf %61, %57 : vector<16x128xf32>
    %cst_41 = arith.constant dense<0.000000e+00> : vector<16xf32>
    %65 = vector.multi_reduction <add>, %64, %cst_41 [1] : vector<16x128xf32> to vector<16xf32>
    %66 = vector.shape_cast %65 : vector<16xf32> to vector<16x1xf32>
    %cst_42 = arith.constant 3.125000e-02 : f32
    %67 = vector.broadcast %cst_42 : f32 to vector<16x1xf32>
    %68 = arith.mulf %63, %67 : vector<16x1xf32>
    %cst_43 = arith.constant 3.125000e-02 : f32
    %69 = vector.broadcast %cst_43 : f32 to vector<16x1xf32>
    %70 = arith.mulf %66, %69 : vector<16x1xf32>
    %71 = arith.mulf %68, %68 : vector<16x1xf32>
    %72 = arith.subf %70, %71 : vector<16x1xf32>
    %cst_44 = arith.constant 9.99999974E-6 : f32
    %73 = vector.broadcast %cst_44 : f32 to vector<16x1xf32>
    %74 = arith.addf %72, %73 : vector<16x1xf32>
    %75 = math.rsqrt %74 : vector<16x1xf32>
    %76 = arith.mulf %75, %58 : vector<16x1xf32>
    %77 = arith.mulf %68, %76 : vector<16x1xf32>
    %78 = arith.subf %59, %77 : vector<16x1xf32>
    %79 = vector.broadcast %76 : vector<16x1xf32> to vector<16x128xf32>
    %80 = arith.mulf %57, %79 : vector<16x128xf32>
    %81 = vector.broadcast %78 : vector<16x1xf32> to vector<16x128xf32>
    %82 = arith.addf %80, %81 : vector<16x128xf32>
    %c0_45 = arith.constant 0 : index
    %c0_46 = arith.constant 0 : index
    %83 = vector.load %arg8[%c0_45, %c0_46] : memref<16x8xf32, #tpu.memory_space<vmem>>, vector<16x8xf32>
    %cst_47 = arith.constant dense<0.000000e+00> : vector<16x128xf32>
    %84 = tpu.matmul %83, %0, %cst_47 {dimension_numbers = #tpu.dot_dimension_numbers<[1], [0], [0], [1], [0, 0, 1, 1], [], []>} : vector<16x8xf32>, vector<8x128xf32>, vector<16x128xf32> -> vector<16x128xf32>
    %c127_i32_48 = arith.constant 127 : i32
    %85 = tpu.dynamic_rotate %84 by %c127_i32_48 dim 1 : vector<16x128xf32>, i32 -> vector<16x128xf32>
    %c0_49 = arith.constant 0 : index
    %c0_50 = arith.constant 0 : index
    %86 = vector.load %arg9[%c0_49, %c0_50] : memref<16x1xf32, #tpu.memory_space<vmem>>, vector<16x1xf32>
    %c0_51 = arith.constant 0 : index
    %c0_52 = arith.constant 0 : index
    %87 = vector.load %arg10[%c0_51, %c0_52] : memref<16x1xf32, #tpu.memory_space<vmem>>, vector<16x1xf32>
    %88 = vector.broadcast %1 : vector<1x128xf32> to vector<16x128xf32>
    %89 = arith.mulf %85, %88 : vector<16x128xf32>
    %cst_53 = arith.constant dense<0.000000e+00> : vector<16xf32>
    %90 = vector.multi_reduction <add>, %89, %cst_53 [1] : vector<16x128xf32> to vector<16xf32>
    %91 = vector.shape_cast %90 : vector<16xf32> to vector<16x1xf32>
    %92 = arith.mulf %89, %85 : vector<16x128xf32>
    %cst_54 = arith.constant dense<0.000000e+00> : vector<16xf32>
    %93 = vector.multi_reduction <add>, %92, %cst_54 [1] : vector<16x128xf32> to vector<16xf32>
    %94 = vector.shape_cast %93 : vector<16xf32> to vector<16x1xf32>
    %cst_55 = arith.constant 3.125000e-02 : f32
    %95 = vector.broadcast %cst_55 : f32 to vector<16x1xf32>
    %96 = arith.mulf %91, %95 : vector<16x1xf32>
    %cst_56 = arith.constant 3.125000e-02 : f32
    %97 = vector.broadcast %cst_56 : f32 to vector<16x1xf32>
    %98 = arith.mulf %94, %97 : vector<16x1xf32>
    %99 = arith.mulf %96, %96 : vector<16x1xf32>
    %100 = arith.subf %98, %99 : vector<16x1xf32>
    %cst_57 = arith.constant 9.99999974E-6 : f32
    %101 = vector.broadcast %cst_57 : f32 to vector<16x1xf32>
    %102 = arith.addf %100, %101 : vector<16x1xf32>
    %103 = math.rsqrt %102 : vector<16x1xf32>
    %104 = arith.mulf %103, %86 : vector<16x1xf32>
    %105 = arith.mulf %96, %104 : vector<16x1xf32>
    %106 = arith.subf %87, %105 : vector<16x1xf32>
    %107 = vector.broadcast %104 : vector<16x1xf32> to vector<16x128xf32>
    %108 = arith.mulf %85, %107 : vector<16x128xf32>
    %109 = vector.broadcast %106 : vector<16x1xf32> to vector<16x128xf32>
    %110 = arith.addf %108, %109 : vector<16x128xf32>
    %111 = arith.addf %82, %110 : vector<16x128xf32>
    %c0_58 = arith.constant 0 : index
    %c0_59 = arith.constant 0 : index
    %112 = vector.load %arg11[%c0_58, %c0_59] : memref<16x128xf32, #tpu.memory_space<vmem>>, vector<16x128xf32>
    tpu.vector_store %arg11[%c0_58, %c0_59], %111 {strides = array<i32>} : memref<16x128xf32, #tpu.memory_space<vmem>>, vector<16x128xf32>,
    return
  }
}

</mosaic_0001>

<bundles_post_ra>
// kernel: tpu_custom_call.1
= control target key start
LH: loop header
LB: loop body
LE: loop exit
PB: predicated region body
PF: predicated region fallthrough
CT: control target
= control target key end

     0   :  { %vm48_vm0 = vcmask 64512   ;;  %s1024_s21 = smov 127   ;;  %s1237_s0 = inlined_call_operand.vmem [shape: f32[8,128], index: 0, kind: input, shape index: {}]   ;;  %s1238_s1 = inlined_call_operand.vmem [shape: f32[1,128], index: 1, kind: input, shape index: {}]   ;;  %s1239_s2 = inlined_call_operand.vmem [shape: f32[3,16,8], index: 2, kind: input, shape index: {}]   ;;  %s1240_s3 = inlined_call_operand.vmem [shape: f32[16,1], index: 3, kind: input, shape index: {}]   ;;  %s1241_s4 = inlined_call_operand.vmem [shape: f32[16,1], index: 4, kind: input, shape index: {}]   ;;  %s1242_s5 = inlined_call_operand.vmem [shape: f32[3,16,16], index: 5, kind: input, shape index: {}]   ;;  %s1243_s6 = inlined_call_operand.vmem [shape: f32[16,1], index: 6, kind: input, shape index: {}]   ;;  %s1244_s7 = inlined_call_operand.vmem [shape: f32[16,1], index: 7, kind: input, shape index: {}]   ;;  %s1245_s8 = inlined_call_operand.vmem [shape: f32[16,8], index: 8, kind: input, shape index: {}]   ;;  %s1246_s9 = inlined_call_operand.vmem [shape: f32[16,1], index: 9, kind: input, shape index: {}]   ;;  %s1247_s10 = inlined_call_operand.vmem [shape: f32[16,1], index: 10, kind: input, shape index: {}]   ;;  %s1248_s11 = inlined_call_operand.hbm [shape: f32[16,128], index: 11, kind: output, shape index: {}]  }
   0x1   :  { %v39_v0 = vld [vmem:[%s1237_s0] sm:$0xff]  ;;  %v856_v1 = vld [vmem:[%s1239_s2 + $0x10] sm:$0xff] }
   0x2   :  { %43 = vrot.lane.b32.xlu0 %v39_v0, %s1024_s21  ;;  %905 = vmatprep.mubr.msk.f32.mxu0 %vm48_vm0, %v856_v1 }
   0x3   :  { %16 = vsyncpa [#allocation3], 0  ;;  %s1025_s22 = smov 126   ;;  %v857_v3 = vld [vmem:[%s1239_s2 + $0x18] sm:$0xff]  ;;  %v41_v4 = vld [vmem:[%s1239_s2] sm:$0xff]  ;;  %v1026_v16 = vmov 0  }
   0x4   :  { %v42_v6 = vld [vmem:[%s1239_s2 + $0x8] sm:$0xff]  ;;  %v862_v7 = vld [vmem:[%s1239_s2 + $0x20] sm:$0xff]  ;;  %971 = vset.pattern.permute.xlu1 %v1026_v16  ;;  %987 = vset.pattern.permute.xlu0 %v1026_v16  ;;  %v867_v58 = vld [vmem:[%s1242_s5 + $0x10] sm:$0xff]  ;;  %vm380_vm1 = vcmask 130048  }
   0x5   :  { %v863_v8 = vld [vmem:[%s1239_s2 + $0x28] sm:$0xff]  ;;  %v1123_v9 = vld [vmem:[%s1238_s1] ss:$0 sm:$0xff]  ;;  %922 = vmatprep.mubr.msk.f32.mxu1 %vm380_vm1, %v867_v58 }
   0x6   :  { %211 = vrot.lane.b32.xlu0 %v39_v0, %s1025_s22  ;;  %v299_v32 = vld [vmem:[%s1240_s3] sm:$0xff]  ;;  %v300_v33 = vld [vmem:[%s1240_s3 + $0x8] sm:$0xff] }
   0x7   :  { %v301_v38 = vld [vmem:[%s1241_s4] sm:$0xff]  ;;  %v302_v41 = vld [vmem:[%s1241_s4 + $0x8] sm:$0xff]  ;;  %s1027_s4 = smov 1  }
   0x8   :  { %v691_v53 = vld [vmem:[%s1245_s8] sm:$0xff]  ;;  %v692_v54 = vld [vmem:[%s1245_s8 + $0x8] sm:$0xff] }
  0x74   :  { %v44_v2 = vpop.permute.xlu0 %43 }
  0x75   :  { %903 = vmatprep.subr.mxu0 %v44_v2 }
  0x76   :  { %904 = vmatpush3.msra.mxu0 %v44_v2 }
  0x77   :  { %906 = vmatmul.mubr.msk.f32.vlgmr.msra.gmra.mrb[0].mxu0 %vm48_vm0, %v857_v3  ;;  %908 = vmatprep.subr.mxu0 %v39_v0 }
  0x78   :  { %909 = vmatpush3.msra.mxu0 %v39_v0  ;;  %v212_v5 = vpop.permute.xlu0 %211  ;;  %910 = vmatprep.mubr.msk.f32.mxu0 %vm48_vm0, %v41_v4 }
  0x79   :  { %913 = vmatprep.subr.mxu0 %v212_v5 }
  0x7f   :  { %911 = vmatmul.mubr.msk.f32.vlgmr.msra.gmra.mrb[0].mxu0 %vm48_vm0, %v42_v6 }
  0x80   :  { %914 = vmatpush3.msra.mxu0 %v212_v5  ;;  %915 = vmatprep.mubr.msk.f32.mxu0 %vm48_vm0, %v862_v7 }
  0x81   :  { %939 = vmatprep.subr.mxu0 %v39_v0 }
  0x87   :  { %916 = vmatmul.mubr.msk.f32.vlgmr.msra.gmra.mrb[0].mxu0 %vm48_vm0, %v863_v8  ;;  %v868_v8 = vld [vmem:[%s1242_s5 + $0x18] sm:$0xff] }
  0x88   :  { %940 = vmatpush3.msra.mxu0 %v39_v0  ;;  %941 = vmatprep.mubr.msk.f32.mxu0 %vm48_vm0, %v691_v53 }
  0x8b   :  { %942 = vmatmul.mubr.msk.f32.vlgmr.msra.gmra.mrb[2].mxu0 %vm48_vm0, %v692_v54  ;;  %v633_v54 = vld [vmem:[%s1243_s6] sm:$0xff] }
 0x15a   :  { %v917_v10 = vpop.f32.mrb[0].mxu0 }
 0x15b   :  { %v288_v11 = vpop.f32.mrb[1].mxu0  ;;  %v310_v12 = vmul.f32 %v917_v10, %v1123_v9 }
 0x15c   :  { %v309_v13 = vmul.f32 %v1123_v9, %v288_v11 }
 0x15d   :  { %313 = vadd.xlane.f32.xlu1 %v310_v12  ;;  %v316_v15 = vmul.f32 %v917_v10, %v310_v12  ;;  %v372_v12 = vld [vmem:[%s1242_s5 + $0x8] sm:$0xff] }
 0x15e   :  { %v315_v14 = vmul.f32 %v309_v13, %v288_v11  ;;  %v943_v63 = vpop.f32.mrb[2].mxu0 }
 0x15f   :  { %v765_v0 = vpop.f32.mrb[3].mxu0 }
 0x160   :  { %317 = vadd.xlane.f32.xlu0 %v315_v14  ;;  %v874_v14 = vld [vmem:[%s1242_s5 + $0x28] sm:$0xff] }
 0x161   :  { %311 = vadd.xlane.f32.xlu1 %v309_v13  ;;  %v873_v13 = vld [vmem:[%s1242_s5 + $0x20] sm:$0xff] }
 0x165   :  { %319 = vadd.xlane.f32.xlu1 %v316_v15 }
 0x1ea   :  { %v314_v17 = vpop.xlane.xlu1 %313 }
 0x1eb   :  { %v322_v20 = vmul.f32 0.03125, %v314_v17 }
 0x1ed   :  { %v318_v18 = vpop.xlane.xlu0 %317  ;;  %v326_v25 = vmul.f32 %v322_v20, %v322_v20 }
 0x1ee   :  { %v312_v19 = vpop.xlane.xlu1 %311  ;;  %v323_v22 = vmul.f32 0.03125, %v318_v18 }
 0x1ef   :  { %v321_v21 = vmul.f32 0.03125, %v312_v19 }
 0x1f1   :  { %v325_v23 = vmul.f32 %v321_v21, %v321_v21 }
 0x1f2   :  { %v320_v24 = vpop.xlane.xlu1 %319 }
 0x1f3   :  { %v327_v26 = vsub.f32 %v323_v22, %v325_v23  ;;  %v324_v27 = vmul.f32 0.03125, %v320_v24 }
 0x1f5   :  { %v329_v28 = vadd.f32 1e-05, %v327_v26  ;;  %v328_v29 = vsub.f32 %v324_v27, %v326_v25 }
 0x1f7   :  { %988 = vrsqrt.f32 %v329_v28  ;;  %v330_v30 = vadd.f32 1e-05, %v328_v29 }
 0x1f9   :  { %990 = vrsqrt.f32 %v330_v30 }
 0x201   :  { %v989_v31 = vpop.eup %988 }
 0x202   :  { %v333_v35 = vmul.f32 %v989_v31, %v299_v32 }
 0x203   :  { %v991_v34 = vpop.eup %990 }
 0x204   :  { %v334_v36 = vmul.f32 %v991_v34, %v300_v33  ;;  %v335_v37 = vmul.f32 %v333_v35, %v321_v21 }
 0x206   :  { %346 = vperm.xlu1 %971, %v334_v36   ;;  %v337_v39 = vsub.f32 %v301_v38, %v335_v37  ;;  %v336_v40 = vmul.f32 %v334_v36, %v322_v20 }
 0x208   :  { %v338_v42 = vsub.f32 %v302_v41, %v336_v40 }
 0x20a   :  { %341 = vperm.xlu1 %971, %v333_v35  }
 0x20e   :  { %353 = vperm.xlu1 %971, %v337_v39  }
 0x212   :  { %358 = vperm.xlu1 %971, %v338_v42  }
 0x285   :  { %v347_v43 = vpop.permute.xlu1 %346 }
 0x286   :  { %v350_v48 = vmul.f32 %v917_v10, %v347_v43  ;;  %v371_v10 = vld [vmem:[%s1242_s5] sm:$0xff] }
 0x289   :  { %v342_v44 = vpop.permute.xlu1 %341 }
 0x28a   :  { %v349_v45 = vmul.f32 %v342_v44, %v288_v11 }
 0x28d   :  { %v354_v46 = vpop.permute.xlu1 %353 }
 0x28e   :  { %v361_v47 = vadd.f32 %v354_v46, %v349_v45 }
 0x290   :  { %v363_v50 = vmax.f32 %v361_v47, 0.0 }
 0x291   :  { %v359_v49 = vpop.permute.xlu1 %358 }
 0x292   :  { %v362_v51 = vadd.f32 %v359_v49, %v350_v48  ;;  %v365_v55 = vmul.f32 %v1123_v9, %v363_v50 }
 0x294   :  { %v364_v52 = vmax.f32 %v362_v51, 0.0 }
 0x296   :  { %v366_v56 = vmul.f32 %v1123_v9, %v364_v52 }
 0x298   :  { %v972_v57 = vpack.i.bf16 %v366_v56, %v365_v55  ;;  %v634_v55 = vld [vmem:[%s1243_s6 + $0x8] sm:$0xff] }
 0x29a   :  { %973 = vrot.lane.b32.xlu0 %v972_v57, %s1027_s4 }
 0x30c   :  { %v974_v59 = vpop.permute.xlu0 %973 }
 0x30d   :  { %v976_v60 = vunpack.i.h.bf16 %v974_v59  ;;  %v975_v61 = vunpack.i.l.bf16 %v974_v59  ;;  %978 = vrot.lane.b32.xlu1 %v974_v59, %s1024_s21 }
 0x30f   :  { %v948_v62 = vpack.c.bf16 %v976_v60, %v975_v61  ;;  %v778_v60 = vld [vmem:[%s1246_s9] sm:$0xff] }
 0x311   :  { %983 = vrot.lane.b32.xlu1 %v974_v59, %s1025_s22 }
 0x315   :  { %774 = vrot.lane.b32.xlu1 %v765_v0, %s1024_s21  ;;  %v779_v0 = vld [vmem:[%s1246_s9 + $0x8] sm:$0xff] }
 0x319   :  { %776 = vrot.lane.b32.xlu1 %v943_v63, %s1024_s21 }
 0x37f   :  { %v979_v1 = vpop.permute.xlu1 %978 }
 0x380   :  { %v981_v2 = vunpack.i.h.bf16 %v979_v1  ;;  %v980_v3 = vunpack.i.l.bf16 %v979_v1 }
 0x382   :  { %v944_v4 = vpack.c.bf16 %v981_v2, %v980_v3  ;;  %v780_v3 = vld [vmem:[%s1247_s10] sm:$0xff] }
 0x383   :  { %v984_v5 = vpop.permute.xlu1 %983 }
 0x384   :  { %v986_v6 = vunpack.i.h.bf16 %v984_v5  ;;  %v985_v7 = vunpack.i.l.bf16 %v984_v5  ;;  %945 = vmatprep.subr.bf16.mxu1 %v944_v4 }
 0x385   :  { %947 = vmatpush3.bf16.msra.mxu1 %v944_v4 }
 0x386   :  { %949 = vmatprep.subr.bf16.mxu1 %v948_v62  ;;  %v952_v11 = vpack.c.bf16 %v986_v6, %v985_v7  ;;  %v636_v6 = vld [vmem:[%s1244_s7 + $0x8] sm:$0xff] }
 0x387   :  { %v1177_v15 = vpop.permute.xlu1 %774 }
 0x388   :  { %923 = vmatmul.mubr.msk.f32.vlgmr.msra.gmra.mrb[0].mxu1 %vm380_vm1, %v868_v8  ;;  %v782_v16 = vmul.f32 %v1123_v9, %v1177_v15 }
 0x389   :  { %951 = vmatpush3.bf16.msra.mxu1 %v948_v62  ;;  %929 = vmatprep.mubr.msk.f32.mxu1 %vm380_vm1, %v371_v10  ;;  %v635_v10 = vld [vmem:[%s1244_s7] sm:$0xff]  ;;  %s1028_s7 = smov [#allocation2]  }
 0x38a   :  { %953 = vmatprep.subr.bf16.mxu1 %v952_v11  ;;  %784 = vadd.xlane.f32.xlu0 %v782_v16  ;;  %v788_v25 = vmul.f32 %v782_v16, %v1177_v15 }
 0x38b   :  { %v1181_v17 = vpop.permute.xlu1 %776 }
 0x38c   :  { %v783_v18 = vmul.f32 %v1123_v9, %v1181_v17 }
 0x38e   :  { %786 = vadd.xlane.f32.xlu1 %v783_v18  ;;  %v789_v26 = vmul.f32 %v783_v18, %v1181_v17 }
 0x390   :  { %930 = vmatmul.mubr.msk.f32.vlgmr.msra.gmra.mrb[0].mxu1 %vm380_vm1, %v372_v12 }
 0x391   :  { %955 = vmatpush3.bf16.msra.mxu1 %v952_v11  ;;  %936 = vmatprep.mubr.msk.f32.mxu1 %vm380_vm1, %v873_v13  ;;  %v781_v13 = vld [vmem:[%s1247_s10 + $0x8] sm:$0xff]  ;;  %s845_s10 = sshll.u32 %s1028_s7, 4  ;;  %s846_s10 = int_to_ptr.vmem [resolvable:$true] %s845_s10 }
 0x392   :  { %s1000_s25 = scalar_lea.vmem %s846_s10, 256  ;;  %p1005_p1 = scmp.lt.s32.totalorder %s846_s10, %s846_s10 }
 0x393   :  { %p1001_p0 = scmp.ne.s32.totalorder %s846_s10, %s1000_s25  ;;  %p1006_p2 = scmp.lt.s32.totalorder %s1000_s25, %s1000_s25 }
 0x395   :  { %p1007_p3 = por %p1006_p2, %p1005_p1 }
 0x397   :  { %p1008_p4 = pnand %p1007_p3, %p1001_p0 }
 0x398   :  { %937 = vmatmul.mubr.msk.f32.vlgmr.msra.gmra.mrb[0].mxu1 %vm380_vm1, %v874_v14 }
 0x417   :  { %v785_v27 = vpop.xlane.xlu0 %784 }
 0x418   :  { %v794_v34 = vmul.f32 0.03125, %v785_v27 }
 0x41a   :  { %v798_v43 = vmul.f32 %v794_v34, %v794_v34 }
 0x41b   :  { %v787_v28 = vpop.xlane.xlu1 %786 }
 0x41c   :  { %v795_v37 = vmul.f32 0.03125, %v787_v28 }
 0x41e   :  { %v799_v47 = vmul.f32 %v795_v37, %v795_v37 }
 0x46b   :  { %v1185_v19 = vpop.f32.mrb[0].mxu1 }
 0x46c   :  { %v1187_v20 = vpop.f32.mrb[1].mxu1  ;;  %v638_v21 = vmul.f32 %v1185_v19, %v1123_v9 }
 0x46d   :  { %v637_v22 = vmul.f32 %v1123_v9, %v1187_v20 }
 0x46e   :  { %641 = vadd.xlane.f32.xlu0 %v638_v21  ;;  %v644_v24 = vmul.f32 %v1185_v19, %v638_v21 }
 0x46f   :  { %639 = vadd.xlane.f32.xlu1 %v637_v22  ;;  %v643_v23 = vmul.f32 %v637_v22, %v1187_v20 }
 0x472   :  { %645 = vadd.xlane.f32.xlu0 %v643_v23 }
 0x473   :  { %647 = vadd.xlane.f32.xlu1 %v644_v24 }
 0x476   :  { %790 = vadd.xlane.f32.xlu0 %v788_v25 }
 0x477   :  { %792 = vadd.xlane.f32.xlu1 %v789_v26 }
 0x4fb   :  { %v642_v29 = vpop.xlane.xlu0 %641 }
 0x4fc   :  { %v640_v30 = vpop.xlane.xlu1 %639  ;;  %v650_v31 = vmul.f32 0.03125, %v642_v29 }
 0x4fd   :  { %v649_v9 = vmul.f32 0.03125, %v640_v30 }
 0x4fe   :  { %v654_v38 = vmul.f32 %v650_v31, %v650_v31 }
 0x4ff   :  { %v653_v32 = vmul.f32 %v649_v9, %v649_v9  ;;  %v646_v33 = vpop.xlane.xlu0 %645 }
 0x500   :  { %v651_v35 = vmul.f32 0.03125, %v646_v33  ;;  %v648_v36 = vpop.xlane.xlu1 %647 }
 0x501   :  { %v652_v39 = vmul.f32 0.03125, %v648_v36 }
 0x502   :  { %v655_v40 = vsub.f32 %v651_v35, %v653_v32 }
 0x503   :  { %v656_v41 = vsub.f32 %v652_v39, %v654_v38  ;;  %v791_v42 = vpop.xlane.xlu0 %790 }
 0x504   :  { %v657_v44 = vadd.f32 1e-05, %v655_v40  ;;  %v796_v45 = vmul.f32 0.03125, %v791_v42  ;;  %v793_v46 = vpop.xlane.xlu1 %792 }
 0x505   :  { %v658_v48 = vadd.f32 1e-05, %v656_v41  ;;  %v797_v49 = vmul.f32 0.03125, %v793_v46 }
 0x506   :  { %992 = vrsqrt.f32 %v657_v44  ;;  %v800_v50 = vsub.f32 %v796_v45, %v798_v43 }
 0x507   :  { %994 = vrsqrt.f32 %v658_v48  ;;  %v801_v51 = vsub.f32 %v797_v49, %v799_v47 }
 0x508   :  { %v802_v52 = vadd.f32 1e-05, %v800_v50 }
 0x509   :  { %v803_v53 = vadd.f32 1e-05, %v801_v51 }
 0x50a   :  { %996 = vrsqrt.f32 %v802_v52 }
 0x50b   :  { %998 = vrsqrt.f32 %v803_v53 }
 0x510   :  { %v993_v56 = vpop.eup %992 }
 0x511   :  { %v995_v57 = vpop.eup %994  ;;  %v661_v58 = vmul.f32 %v993_v56, %v633_v54 }
 0x512   :  { %v662_v59 = vmul.f32 %v995_v57, %v634_v55 }
 0x513   :  { %669 = vperm.xlu0 %987, %v661_v58   ;;  %v663_v8 = vmul.f32 %v661_v58, %v649_v9 }
 0x514   :  { %v997_v61 = vpop.eup %996  ;;  %674 = vperm.xlu1 %971, %v662_v59   ;;  %v664_v5 = vmul.f32 %v662_v59, %v650_v31 }
 0x515   :  { %v806_v62 = vmul.f32 %v997_v61, %v778_v60  ;;  %v999_v63 = vpop.eup %998  ;;  %v665_v11 = vsub.f32 %v635_v10, %v663_v8 }
 0x516   :  { %v807_v1 = vmul.f32 %v999_v63, %v779_v0  ;;  %v666_v7 = vsub.f32 %v636_v6, %v664_v5 }
 0x517   :  { %v808_v2 = vmul.f32 %v806_v62, %v794_v34 }
 0x518   :  { %814 = vperm.xlu1 %971, %v806_v62   ;;  %v809_v12 = vmul.f32 %v807_v1, %v795_v37 }
 0x519   :  { %v810_v4 = vsub.f32 %v780_v3, %v808_v2 }
 0x51a   :  { %v811_v14 = vsub.f32 %v781_v13, %v809_v12 }
 0x51c   :  { %819 = vperm.xlu1 %971, %v807_v1  }
 0x520   :  { %826 = vperm.xlu1 %971, %v810_v4  }
 0x524   :  { %686 = vperm.xlu1 %971, %v666_v7  }
 0x528   :  { %681 = vperm.xlu1 %971, %v665_v11  }
 0x52c   :  { %831 = vperm.xlu1 %971, %v811_v14  }
 0x592   :  { %v670_v23 = vpop.permute.xlu0 %669 }
 0x593   :  { %v675_v16 = vpop.permute.xlu1 %674  ;;  %v677_v25 = vmul.f32 %v670_v23, %v1187_v20 }
 0x594   :  { %v678_v30 = vmul.f32 %v1185_v19, %v675_v16 }
 0x597   :  { %v815_v18 = vpop.permute.xlu1 %814 }
 0x598   :  { %v822_v26 = vmul.f32 %v815_v18, %v1177_v15 }
 0x59b   :  { %v820_v21 = vpop.permute.xlu1 %819 }
 0x59c   :  { %v823_v31 = vmul.f32 %v820_v21, %v1181_v17 }
 0x59f   :  { %v827_v22 = vpop.permute.xlu1 %826 }
 0x5a0   :  { %v834_v28 = vadd.f32 %v827_v22, %v822_v26 }
 0x5a3   :  { %v687_v24 = vpop.permute.xlu1 %686 }
 0x5a4   :  { %v690_v33 = vadd.f32 %v687_v24, %v678_v30 }
 0x5a7   :  { %v682_v27 = vpop.permute.xlu1 %681 }
 0x5a8   :  { %v689_v29 = vadd.f32 %v682_v27, %v677_v25 }
 0x5aa   :  { %v836_v9 = vadd.f32 %v834_v28, %v689_v29 }
 0x5ab   :  { %v832_v32 = vpop.permute.xlu1 %831 }
 0x5ac   :  { %838 = vst [vmem:[#allocation2] sm:$0xff] %v836_v9  ;;  %v835_v34 = vadd.f32 %v832_v32, %v823_v31 }
 0x5ae   :  { %v837_v35 = vadd.f32 %v835_v34, %v690_v33 }
 0x5b0   :  { %839 = vst [vmem:[#allocation2 + $0x8] sm:$0xff] %v837_v35 }
 0x5b1   :  { %1011 = shalt.err (!%p1008_p4)
}
 0x5b2   :  { %s1012_s27 = scalar_lea.hbm %s1248_s11, 256 }
 0x5b3   :  { %p1013_p5 = scmp.ne.s32.totalorder %s1248_s11, %s1012_s27  ;;  %p1016_p6 = scmp.lt.u32.totalorder %s1012_s27, %s1248_s11 }
 0x5b5   :  { %p1018_p7 = pnand %p1016_p6, %p1013_p5 }
 0x5b7   :  { %1021 = shalt.err (!%p1018_p7)
}
 0x5b8   :  { %s1029_s30 = smov 128   ;;  %s1030_s12 = smov 8  }
 0x5b9   :  { %851 = dma.vmem_to_hbm [thread:$0]  %s846_s10, 256, %s1248_s11, [#allocation3], %s1029_s30, %s1029_s30, %s1030_s12  }
 0x5ba   :  { %1022 = dma.done.wait [#allocation3], 256  }
 0x5bb   :  { %1023 = vsyncadd [#allocation3], 4294967040 }
 0x5bc   :  { %855 = vsyncpa [#allocation3], 1 }

</bundles_post_ra>
